<compile_context>
chip_gen: v6e
topology: v6e:2x2x1
jax: 0.10.0
libtpu: 0.0.40
codegen_flags: <defaults>
</compile_context>

<pallas_src>
import functools

import jax
import jax.numpy as jnp
from jax.experimental import pallas as pl
from jax.experimental.pallas import tpu as pltpu


def _round_up(x, m):
    return ((x + m - 1) // m) * m


def _mlp_kernel(x_ref, w1_ref, w2_ref, w3_ref, o_ref):
    """Fused forward pass for one batch tile (all weights resident in VMEM)."""
    # x arrives f32; cast in-kernel (VPU) right before the MXU -> no extra HBM traffic.
    x = x_ref[...].astype(jnp.bfloat16)
    # Layer 1: Linear(input_dim -> width, bias=False) + ReLU   (bf16 in, f32 acc)
    h = jnp.dot(x, w1_ref[...], preferred_element_type=jnp.float32)
    h = jnp.maximum(h, 0.0).astype(jnp.bfloat16)
    # Layer 2 (depth-2 hidden layer): Linear(width -> width, bias=False) + ReLU
    h = jnp.dot(h, w2_ref[...], preferred_element_type=jnp.float32)
    h = jnp.maximum(h, 0.0).astype(jnp.bfloat16)
    # Output layer: Linear(width -> num_classes padded to 128), no activation
    out = jnp.dot(h, w3_ref[...], preferred_element_type=jnp.float32)
    o_ref[...] = out.astype(o_ref.dtype)


def prepare_params(w1, w2, w3):
    """One-time weight prep (hoisted out of the per-call path).

    Weights are (in_features, out_features). Returns bf16 w1/w2 and w3 zero-padded
    along the class dimension to a lane-dense multiple of 128.
    """
    num_classes = w3.shape[1]
    n_pad = _round_up(max(num_classes, 128), 128)
    w1_bf = w1.astype(jnp.bfloat16)
    w2_bf = w2.astype(jnp.bfloat16)
    w3_p = (
        jnp.zeros((w3.shape[0], n_pad), dtype=jnp.bfloat16)
        .at[:, :num_classes]
        .set(w3.astype(jnp.bfloat16))
    )
    return w1_bf, w2_bf, w3_p


def _pick_tile(B, batch_tile):
    """Batch-tile heuristic: multiple of 8 rows, capped at batch_tile, and >=2 grid
    steps when B allows (keeps both v7x TensorCores busy)."""
    if B <= 8:
        return B  # equals the full array dim -> always legal
    tile = min(batch_tile, _round_up((B + 1) // 2, 8))
    return max(tile, 8)


@functools.partial(jax.jit, static_argnames=("num_classes", "batch_tile"))
def simple_net_forward(x_nchw, w1_bf, w2_bf, w3_padded, *, num_classes=10, batch_tile=1024):
    """x_nchw: (B, C, H, W) float32; weights from prepare_params().

    Same forward pass as the PyTorch simpleNet (bias-free 3-layer MLP); bf16 on the MXU
    with f32 accumulation, 128-lane-padded output sliced back to num_classes.
    """
    B = x_nchw.shape[0]
    input_dim = w1_bf.shape[0]
    width = w1_bf.shape[1]
    n_pad = w3_padded.shape[1]

    # Glue: flatten exactly like x.view(x.size(0), input_dim); stays f32 (cast in-kernel).
    x2d = x_nchw.reshape(B, input_dim)

    tile = _pick_tile(B, batch_tile)
    # Partial final block is fine: rows are independent and OOB rows are never stored.
    grid = (pl.cdiv(B, tile),)

    flops = 2 * B * (input_dim * width + width * width + width * n_pad)
    bytes_accessed = (
        B * input_dim * 4                                            # x (f32, single read)
        + (input_dim * width + width * width + width * n_pad) * 2   # weights (bf16)
        + B * n_pad * 4                                              # logits (f32)
    )

    out = pl.pallas_call(
        _mlp_kernel,
        out_shape=jax.ShapeDtypeStruct((B, n_pad), jnp.float32),
        grid_spec=pltpu.PrefetchScalarGridSpec(
            num_scalar_prefetch=0,
            grid=grid,
            in_specs=[
                # batch tile of the flattened input (the only pipelined HBM stream)
                pl.BlockSpec((tile, input_dim), lambda i: (i, 0)),
                # weights are small (~265 KiB bf16); keep the full matrices resident
                pl.BlockSpec((input_dim, width), lambda i: (0, 0)),
                pl.BlockSpec((width, width), lambda i: (0, 0)),
                pl.BlockSpec((width, n_pad), lambda i: (0, 0)),
            ],
            out_specs=pl.BlockSpec((tile, n_pad), lambda i: (i, 0)),
        ),
        compiler_params=pltpu.CompilerParams(
            dimension_semantics=("parallel",),
            vmem_limit_bytes=32 * 1024 * 1024,
        ),
        cost_estimate=pl.CostEstimate(
            flops=flops, transcendentals=0, bytes_accessed=bytes_accessed
        ),
    )(x2d, w1_bf, w2_bf, w3_padded)

    # Strip the lane padding of the class dimension.
    return out[:, :num_classes]


def init_params(key, input_dim=28 * 28, width=128, num_classes=10):
    """Deterministic init mimicking nn.Linear default U(-1/sqrt(fan_in), 1/sqrt(fan_in)).

    Returned weights are already transposed to (in_features, out_features), so the
    kernel computes x @ W  (== x @ W_pt.T in PyTorch convention).
    """
    k1, k2, k3 = jax.random.split(key, 3)

    def lin(k, fan_in, fan_out):
        bound = 1.0 / jnp.sqrt(jnp.float32(fan_in))
        return jax.random.uniform(
            k, (fan_in, fan_out), dtype=jnp.float32, minval=-bound, maxval=bound
        )

    w1 = lin(k1, input_dim, width)        # Linear(input_dim, width, bias=False)
    w2 = lin(k2, width, width)            # depth=3 -> one hidden Linear(width, width)
    w3 = lin(k3, width, num_classes)      # Linear(width, num_classes, bias=False)
    return w1, w2, w3


def _reference_forward_bf16(x_nchw, w1, w2, w3):
    """Pure-JAX reference with the same bf16-on-MXU / f32-accumulation numerics."""
    x = x_nchw.reshape(x_nchw.shape[0], -1).astype(jnp.bfloat16)
    w1b = w1.astype(jnp.bfloat16)
    w2b = w2.astype(jnp.bfloat16)
    w3b = w3.astype(jnp.bfloat16)
    h = jnp.maximum(jnp.dot(x, w1b, preferred_element_type=jnp.float32), 0.0)
    h = h.astype(jnp.bfloat16)
    h = jnp.maximum(jnp.dot(h, w2b, preferred_element_type=jnp.float32), 0.0)
    h = h.astype(jnp.bfloat16)
    return jnp.dot(h, w3b, preferred_element_type=jnp.float32)


if __name__ == "__main__":
    key = jax.random.PRNGKey(0)
    kx, kp = jax.random.split(key)

    # Small MNIST-like input: batch=8, NCHW (8, 1, 28, 28) -> input_dim = 784
    B, C, H, W = 8, 1, 28, 28
    x = jax.random.normal(kx, (B, C, H, W), dtype=jnp.float32)

    w1, w2, w3 = init_params(kp, input_dim=C * H * W, width=128, num_classes=10)
    w1_bf, w2_bf, w3_p = prepare_params(w1, w2, w3)   # one-time weight prep

    out = simple_net_forward(x, w1_bf, w2_bf, w3_p, num_classes=10, batch_tile=1024)
    out = jax.block_until_ready(out)

    ref = _reference_forward_bf16(x, w1, w2, w3)
    assert out.shape == (B, 10)
    assert jnp.allclose(out, ref, atol=1e-2, rtol=1e-2), "mismatch vs pure-JAX reference"

    # Loose sanity-check against the exact f32 PyTorch-equivalent math as well.
    # TODO(synk): bf16 weights/activations are a deliberate deviation from f32 PyTorch;
    # keep everything f32 if exact parity is required (at higher HBM cost).
    x_flat = x.reshape(B, -1)
    ref_f32 = jnp.maximum(jnp.maximum(x_flat @ w1, 0.0) @ w2, 0.0) @ w3
    assert jnp.allclose(out, ref_f32, atol=5e-2, rtol=5e-2), "bf16 drift too large"

    print("KERNEL_OK")
</pallas_src>

<mosaic_0001>
module attributes {stable_mosaic.version = 11 : i64} {
  func.func @_mlp_kernel(%arg0: i32, %arg1: memref<8x784xf32, #tpu.memory_space<vmem>>, %arg2: memref<784x128xbf16, #tpu.memory_space<vmem>>, %arg3: memref<128x128xbf16, #tpu.memory_space<vmem>>, %arg4: memref<128x128xbf16, #tpu.memory_space<vmem>>, %arg5: memref<8x128xf32, #tpu.memory_space<vmem>>) attributes {dimension_semantics = [#tpu.dimension_semantics<parallel>], iteration_bounds = array<i64: 1>, scalar_prefetch = 0 : i64, scratch_operands = 0 : i64, tpu.core_type = #tpu.core_type<tc>, window_params = [{transform_indices = @transform_0, window_bounds = array<i64: 8, 784>}, {pipeline_mode = #tpu.pipeline_mode<synchronous>, transform_indices = @transform_1, window_bounds = array<i64: 784, 128>}, {pipeline_mode = #tpu.pipeline_mode<synchronous>, transform_indices = @transform_2, window_bounds = array<i64: 128, 128>}, {pipeline_mode = #tpu.pipeline_mode<synchronous>, transform_indices = @transform_3, window_bounds = array<i64: 128, 128>}, {transform_indices = @transform_4, window_bounds = array<i64: 8, 128>}]} {
    %c0 = arith.constant 0 : index
    %c0_0 = arith.constant 0 : index
    %0 = vector.load %arg1[%c0, %c0_0] : memref<8x784xf32, #tpu.memory_space<vmem>>, vector<8x784xf32>
    %1 = arith.truncf %0 : vector<8x784xf32> to vector<8x784xbf16>
    %c0_1 = arith.constant 0 : index
    %c0_2 = arith.constant 0 : index
    %2 = vector.load %arg2[%c0_1, %c0_2] : memref<784x128xbf16, #tpu.memory_space<vmem>>, vector<784x128xbf16>
    %cst = arith.constant dense<0.000000e+00> : vector<8x128xf32>
    %3 = tpu.matmul %1, %2, %cst {dimension_numbers = #tpu.dot_dimension_numbers<[1], [0], [0], [1], [0, 0, 1, 1], [], []>} : vector<8x784xbf16>, vector<784x128xbf16>, vector<8x128xf32> -> vector<8x128xf32>
    %cst_3 = arith.constant 0.000000e+00 : f32
    %4 = vector.broadcast %cst_3 : f32 to vector<8x128xf32>
    %5 = arith.maximumf %3, %4 : vector<8x128xf32>
    %6 = arith.truncf %5 : vector<8x128xf32> to vector<8x128xbf16>
    %c0_4 = arith.constant 0 : index
    %c0_5 = arith.constant 0 : index
    %7 = vector.load %arg3[%c0_4, %c0_5] : memref<128x128xbf16, #tpu.memory_space<vmem>>, vector<128x128xbf16>
    %cst_6 = arith.constant dense<0.000000e+00> : vector<8x128xf32>
    %8 = tpu.matmul %6, %7, %cst_6 {dimension_numbers = #tpu.dot_dimension_numbers<[1], [0], [0], [1], [0, 0, 1, 1], [], []>} : vector<8x128xbf16>, vector<128x128xbf16>, vector<8x128xf32> -> vector<8x128xf32>
    %cst_7 = arith.constant 0.000000e+00 : f32
    %9 = vector.broadcast %cst_7 : f32 to vector<8x128xf32>
    %10 = arith.maximumf %8, %9 : vector<8x128xf32>
    %11 = arith.truncf %10 : vector<8x128xf32> to vector<8x128xbf16>
    %c0_8 = arith.constant 0 : index
    %c0_9 = arith.constant 0 : index
    %12 = vector.load %arg4[%c0_8, %c0_9] : memref<128x128xbf16, #tpu.memory_space<vmem>>, vector<128x128xbf16>
    %cst_10 = arith.constant dense<0.000000e+00> : vector<8x128xf32>
    %13 = tpu.matmul %11, %12, %cst_10 {dimension_numbers = #tpu.dot_dimension_numbers<[1], [0], [0], [1], [0, 0, 1, 1], [], []>} : vector<8x128xbf16>, vector<128x128xbf16>, vector<8x128xf32> -> vector<8x128xf32>
    %c0_11 = arith.constant 0 : index
    %c0_12 = arith.constant 0 : index
    %14 = vector.load %arg5[%c0_11, %c0_12] : memref<8x128xf32, #tpu.memory_space<vmem>>, vector<8x128xf32>
    tpu.vector_store %arg5[%c0_11, %c0_12], %13 {strides = array<i32>} : memref<8x128xf32, #tpu.memory_space<vmem>>, vector<8x128xf32>,
    return
  }
  func.func @transform_0(%arg0: i32) -> (i32, i32) {
    %c0_i32 = arith.constant 0 : i32
    %c0_i32_0 = arith.constant 0 : i32
    return %arg0, %c0_i32 : i32, i32
  }
  func.func @transform_1(%arg0: i32) -> (i32, i32) {
    %c0_i32 = arith.constant 0 : i32
    %c0_i32_0 = arith.constant 0 : i32
    %c0_i32_1 = arith.constant 0 : i32
    return %c0_i32, %c0_i32_0 : i32, i32
  }
  func.func @transform_2(%arg0: i32) -> (i32, i32) {
    %c0_i32 = arith.constant 0 : i32
    %c0_i32_0 = arith.constant 0 : i32
    %c0_i32_1 = arith.constant 0 : i32
    return %c0_i32, %c0_i32_0 : i32, i32
  }
  func.func @transform_3(%arg0: i32) -> (i32, i32) {
    %c0_i32 = arith.constant 0 : i32
    %c0_i32_0 = arith.constant 0 : i32
    %c0_i32_1 = arith.constant 0 : i32
    return %c0_i32, %c0_i32_0 : i32, i32
  }
  func.func @transform_4(%arg0: i32) -> (i32, i32) {
    %c0_i32 = arith.constant 0 : i32
    %c0_i32_0 = arith.constant 0 : i32
    return %arg0, %c0_i32 : i32, i32
  }
}

</mosaic_0001>

<bundles_post_ra>
// kernel: simple_net_forward.1
= control target key start
LH: loop header
LB: loop body
LE: loop exit
PB: predicated region body
PF: predicated region fallthrough
CT: control target
= control target key end

     0   :  { %v1104_v41 = vmov 0.0   ;;  %vm1105_vm0 = vmmov 0   ;;  %vm425_vm1 = vcmask 130048   ;;  %s1374_s0 = inlined_call_operand.vmem [shape: f32[8,784], index: 0, kind: input, shape index: {}]   ;;  %s1375_s1 = inlined_call_operand.vmem [shape: bf16[784,128], index: 1, kind: input, shape index: {}]   ;;  %s1376_s2 = inlined_call_operand.vmem [shape: bf16[128,128], index: 2, kind: input, shape index: {}]   ;;  %s1377_s3 = inlined_call_operand.vmem [shape: bf16[128,128], index: 3, kind: input, shape index: {}]   ;;  %s1378_s4 = inlined_call_operand.hbm [shape: f32[8,128], index: 4, kind: output, shape index: {}]  }
   0x1   :  { %v1017_v0 = vld [vmem:[%s1375_s1 + $0x78] sm:$0xff]   ;;  %v1021_v4 = vld [vmem:[%s1375_s1 + $0x70] sm:$0xff]   ;;  %v1025_v8 = vld [vmem:[%s1375_s1 + $0x68] sm:$0xff]  }
   0x2   :  { %v1018_v1 = vld [vmem:[%s1375_s1 + $0xf8] sm:$0xff]   ;;  %882 = vmatprep.subr.bf16.mxu0 %v1017_v0  ;;  %v1022_v5 = vld [vmem:[%s1375_s1 + $0xf0] sm:$0xff]   ;;  %v1026_v9 = vld [vmem:[%s1375_s1 + $0xe8] sm:$0xff]  }
   0x3   :  { %v1019_v2 = vld [vmem:[%s1375_s1 + $0x38] sm:$0xff]   ;;  %904 = vmatprep.subr.bf16.mxu1 %v1018_v1  ;;  %v1023_v6 = vld [vmem:[%s1375_s1 + $0x30] sm:$0xff]   ;;  %v1027_v10 = vld [vmem:[%s1375_s1 + $0x28] sm:$0xff]  }
   0x4   :  { %v1020_v3 = vld [vmem:[%s1375_s1 + $0xb8] sm:$0xff]   ;;  %883 = vmatpush3.bf16.msra.mxu0 %v1019_v2  ;;  %v1024_v7 = vld [vmem:[%s1375_s1 + $0xb0] sm:$0xff]   ;;  %v1028_v11 = vld [vmem:[%s1375_s1 + $0xa8] sm:$0xff]  }
   0x5   :  { %905 = vmatpush3.bf16.msra.mxu1 %v1020_v3  ;;  %884 = vmatprep.subr.bf16.mxu0 %v1021_v4  ;;  %v1029_v12 = vld [vmem:[%s1375_s1 + $0x60] sm:$0xff]   ;;  %v1033_v16 = vld [vmem:[%s1375_s1 + $0x58] sm:$0xff]   ;;  %v1037_v20 = vld [vmem:[%s1375_s1 + $0x50] sm:$0xff]  }
   0x6   :  { %906 = vmatprep.subr.bf16.mxu1 %v1022_v5  ;;  %v1030_v13 = vld [vmem:[%s1375_s1 + $0xe0] sm:$0xff]   ;;  %v1034_v17 = vld [vmem:[%s1375_s1 + $0xd8] sm:$0xff]   ;;  %v1038_v21 = vld [vmem:[%s1375_s1 + $0xd0] sm:$0xff]  }
   0x7   :  { %v1031_v14 = vld [vmem:[%s1375_s1 + $0x20] sm:$0xff]   ;;  %v1035_v18 = vld [vmem:[%s1375_s1 + $0x18] sm:$0xff]   ;;  %v1039_v22 = vld [vmem:[%s1375_s1 + $0x10] sm:$0xff]  }
   0x8   :  { %885 = vmatpush3.bf16.msra.mxu0 %v1023_v6  ;;  %v1032_v15 = vld [vmem:[%s1375_s1 + $0xa0] sm:$0xff]   ;;  %v1036_v19 = vld [vmem:[%s1375_s1 + $0x98] sm:$0xff]   ;;  %v1040_v23 = vld [vmem:[%s1375_s1 + $0x90] sm:$0xff]  }
   0x9   :  { %907 = vmatpush3.bf16.msra.mxu1 %v1024_v7  ;;  %886 = vmatprep.subr.bf16.mxu0 %v1025_v8  ;;  %v1041_v24 = vld [vmem:[%s1375_s1 + $0x48] sm:$0xff]   ;;  %v1045_v28 = vld [vmem:[%s1375_s1 + $0x40] sm:$0xff]   ;;  %v22_v33 = vld [vmem:[%s1374_s0 + $0x18] sm:$0xff] }
   0xa   :  { %908 = vmatprep.subr.bf16.mxu1 %v1026_v9  ;;  %v1042_v25 = vld [vmem:[%s1375_s1 + $0xc8] sm:$0xff]   ;;  %v1046_v29 = vld [vmem:[%s1375_s1 + $0xc0] sm:$0xff]   ;;  %v29_v36 = vpack.c.bf16 %v22_v33, %v22_v33  ;;  %v21_v38 = vld [vmem:[%s1374_s0 + $0x10] sm:$0xff] }
   0xb   :  { %v1043_v26 = vld [vmem:[%s1375_s1 + $0x8] sm:$0xff]   ;;  %v1047_v30 = vld [vmem:[%s1375_s1] sm:$0xff]   ;;  %v28_v39 = vpack.c.bf16 %v21_v38, %v21_v38  ;;  %v1049_v40 = vld [vmem:[%s1375_s1 + $0x178] sm:$0xff]  }
   0xc   :  { %887 = vmatpush3.bf16.msra.mxu0 %v1027_v10  ;;  %v1044_v27 = vld [vmem:[%s1375_s1 + $0x88] sm:$0xff]   ;;  %v1048_v31 = vld [vmem:[%s1375_s1 + $0x80] sm:$0xff]   ;;  %501 = vmatprep.mubr.bf16.mxu1 %v29_v36  ;;  %v1050_v42 = vld [vmem:[%s1375_s1 + $0x138] sm:$0xff]  }
   0xd   :  { %909 = vmatpush3.bf16.msra.mxu1 %v1028_v11  ;;  %888 = vmatprep.subr.bf16.mxu0 %v1029_v12  ;;  %v20_v32 = vld [vmem:[%s1374_s0 + $0x8] sm:$0xff]  ;;  %v19_v34 = vld [vmem:[%s1374_s0] sm:$0xff]  ;;  %v1051_v43 = vld [vmem:[%s1375_s1 + $0x170] sm:$0xff]  }
   0xe   :  { %910 = vmatprep.subr.bf16.mxu1 %v1030_v13  ;;  %v27_v35 = vpack.c.bf16 %v20_v32, %v20_v32  ;;  %v26_v37 = vpack.c.bf16 %v19_v34, %v19_v34  ;;  %v1052_v44 = vld [vmem:[%s1375_s1 + $0x130] sm:$0xff]   ;;  %v1053_v45 = vld [vmem:[%s1375_s1 + $0x168] sm:$0xff]   ;;  %v1055_v47 = vld [vmem:[%s1375_s1 + $0x160] sm:$0xff]  }
   0xf   :  { %v1054_v46 = vld [vmem:[%s1375_s1 + $0x128] sm:$0xff]   ;;  %v1056_v48 = vld [vmem:[%s1375_s1 + $0x120] sm:$0xff]   ;;  %v1057_v49 = vld [vmem:[%s1375_s1 + $0x158] sm:$0xff]  }
  0x10   :  { %889 = vmatpush3.bf16.msra.mxu0 %v1031_v14  ;;  %461 = vmatprep.mubr.bf16.mxu0 %v27_v35  ;;  %v1058_v50 = vld [vmem:[%s1375_s1 + $0x118] sm:$0xff]   ;;  %v1059_v51 = vld [vmem:[%s1375_s1 + $0x150] sm:$0xff]   ;;  %v1065_v52 = vld [vmem:[%s1375_s1 + $0x180] sm:$0xff]  }
  0x11   :  { %911 = vmatpush3.bf16.msra.mxu1 %v1032_v15  ;;  %890 = vmatprep.subr.bf16.mxu0 %v1033_v16  ;;  %v24_v53 = vld [vmem:[%s1374_s0 + $0x28] sm:$0xff]  ;;  %v25_v55 = vld [vmem:[%s1374_s0 + $0x30] sm:$0xff]  ;;  %v1063_v60 = vld [vmem:[%s1375_s1 + $0x140] sm:$0xff]  }
  0x12   :  { %912 = vmatprep.subr.bf16.mxu1 %v1034_v17  ;;  %v31_v54 = vpack.c.bf16 %v24_v53, %v24_v53  ;;  %v1060_v56 = vld [vmem:[%s1375_s1 + $0x110] sm:$0xff]   ;;  %v32_v57 = vpack.c.bf16 %v25_v55, %v25_v55  ;;  %v1061_v58 = vld [vmem:[%s1375_s1 + $0x148] sm:$0xff]   ;;  %v1064_v61 = vld [vmem:[%s1375_s1 + $0x100] sm:$0xff]  }
  0x13   :  { %v1062_v59 = vld [vmem:[%s1375_s1 + $0x108] sm:$0xff]   ;;  %v23_v62 = vld [vmem:[%s1374_s0 + $0x20] sm:$0xff] }
  0x14   :  { %891 = vmatpush3.bf16.msra.mxu0 %v1035_v18 }
  0x15   :  { %913 = vmatpush3.bf16.msra.mxu1 %v1036_v19  ;;  %892 = vmatprep.subr.bf16.mxu0 %v1037_v20 }
  0x16   :  { %914 = vmatprep.subr.bf16.mxu1 %v1038_v21 }
  0x18   :  { %893 = vmatpush3.bf16.msra.mxu0 %v1039_v22 }
  0x19   :  { %915 = vmatpush3.bf16.msra.mxu1 %v1040_v23  ;;  %894 = vmatprep.subr.bf16.mxu0 %v1041_v24 }
  0x1a   :  { %916 = vmatprep.subr.bf16.mxu1 %v1042_v25 }
  0x1c   :  { %895 = vmatpush3.bf16.msra.mxu0 %v1043_v26 }
  0x1d   :  { %917 = vmatpush3.bf16.msra.mxu1 %v1044_v27  ;;  %896 = vmatprep.subr.bf16.mxu0 %v1045_v28 }
  0x1e   :  { %918 = vmatprep.subr.bf16.mxu1 %v1046_v29 }
  0x20   :  { %897 = vmatpush3.bf16.msra.mxu0 %v1047_v30 }
  0x21   :  { %919 = vmatpush3.bf16.msra.mxu1 %v1048_v31  ;;  %926 = vmatprep.subr.bf16.mxu0 %v1049_v40 }
  0x22   :  { %968 = vmatprep.subr.bf16.mxu1 %v1104_v41 }
  0x23   :  { %462 = vmatmul.mubr.bf16.vlgmr.msra.gmra.mxu0 %v26_v37 }
  0x24   :  { %502 = vmatmul.mubr.bf16.vlgmr.msra.gmra.mxu1 %v28_v39  ;;  %927 = vmatpush3.bf16.msra.mxu0 %v1050_v42 }
  0x25   :  { %970 = vmatprep.mubr.msk.bf16.mxu1 %vm1105_vm0, %v1104_v41  ;;  %928 = vmatprep.subr.bf16.mxu0 %v1051_v43 }
  0x26   :  { %969 = vmatpush3.bf16.msra.mxu1 %v1065_v52  ;;  %541 = vmatprep.mubr.bf16.mxu0 %v31_v54 }
  0x27   :  { %974 = vmatprep.subr.bf16.mxu1 %v1104_v41 }
  0x28   :  { %929 = vmatpush3.bf16.msra.mxu0 %v1052_v44 }
  0x29   :  { %930 = vmatprep.subr.bf16.mxu0 %v1053_v45 }
  0x2c   :  { %931 = vmatpush3.bf16.msra.mxu0 %v1054_v46  ;;  %971 = vmatmul.mubr.msk.bf16.vlgmr.msra.gmra.mxu1 %vm425_vm1, %v32_v57 }
  0x2d   :  { %932 = vmatprep.subr.bf16.mxu0 %v1055_v47  ;;  %990 = vmatprep.mubr.msk.bf16.mxu1 %vm1105_vm0, %v1104_v41 }
  0x30   :  { %933 = vmatpush3.bf16.msra.mxu0 %v1056_v48 }
  0x31   :  { %934 = vmatprep.subr.bf16.mxu0 %v1057_v49 }
  0x34   :  { %935 = vmatpush3.bf16.msra.mxu0 %v1058_v50 }
  0x35   :  { %936 = vmatprep.subr.bf16.mxu0 %v1059_v51 }
  0x38   :  { %937 = vmatpush3.bf16.msra.mxu0 %v1060_v56 }
  0x39   :  { %938 = vmatprep.subr.bf16.mxu0 %v1061_v58 }
  0x3c   :  { %939 = vmatpush3.bf16.msra.mxu0 %v1062_v59 }
  0x3d   :  { %9 = vsyncpa [#allocation3], 0  ;;  %940 = vmatprep.subr.bf16.mxu0 %v1063_v60  ;;  %v30_v63 = vpack.c.bf16 %v23_v62, %v23_v62  ;;  %v1066_v0 = vld [vmem:[%s1376_s2 + $0x38] sm:$0xff]   ;;  %v1067_v1 = vld [vmem:[%s1376_s2 + $0x30] sm:$0xff]   ;;  %s1106_s25 = smov [#allocation2]  }
  0x3e   :  { %975 = vmatpush3.bf16.msra.mxu1 %v1066_v0  ;;  %v1068_v2 = vld [vmem:[%s1376_s2 + $0x28] sm:$0xff]   ;;  %v1069_v3 = vld [vmem:[%s1376_s2 + $0x20] sm:$0xff]   ;;  %v1070_v4 = vld [vmem:[%s1376_s2 + $0x18] sm:$0xff]   ;;  %s808_s0 = sshll.u32 %s1106_s25, 4  ;;  %s809_s0 = int_to_ptr.vmem [resolvable:$true] %s808_s0 }
  0x3f   :  { %976 = vmatprep.subr.bf16.mxu1 %v1104_v41  ;;  %v1071_v5 = vld [vmem:[%s1376_s2 + $0x10] sm:$0xff]   ;;  %v1072_v6 = vld [vmem:[%s1376_s2 + $0x8] sm:$0xff]   ;;  %v1073_v7 = vld [vmem:[%s1376_s2] sm:$0xff]   ;;  %s1082_s26 = scalar_lea.vmem %s809_s0, 128  ;;  %p1087_p1 = scmp.lt.s32.totalorder %s809_s0, %s809_s0 }
  0x40   :  { %941 = vmatpush3.bf16.msra.mxu0 %v1064_v61  ;;  %v1074_v8 = vld [vmem:[%s1377_s3 + $0x38] sm:$0xff]   ;;  %v1075_v9 = vld [vmem:[%s1377_s3 + $0x30] sm:$0xff]   ;;  %v1076_v10 = vld [vmem:[%s1377_s3 + $0x28] sm:$0xff]   ;;  %p1083_p0 = scmp.ne.s32.totalorder %s809_s0, %s1082_s26  ;;  %p1088_p2 = scmp.lt.s32.totalorder %s1082_s26, %s1082_s26 }
  0x41   :  { %994 = vmatprep.subr.bf16.mxu0 %v1104_v41  ;;  %v1077_v11 = vld [vmem:[%s1377_s3 + $0x20] sm:$0xff]   ;;  %v1078_v12 = vld [vmem:[%s1377_s3 + $0x18] sm:$0xff]   ;;  %v1079_v13 = vld [vmem:[%s1377_s3 + $0x10] sm:$0xff]  }
  0x42   :  { %977 = vmatpush3.bf16.msra.mxu1 %v1067_v1  ;;  %v1080_v14 = vld [vmem:[%s1377_s3 + $0x8] sm:$0xff]   ;;  %v1081_v39 = vld [vmem:[%s1377_s3] sm:$0xff]   ;;  %p1089_p3 = por %p1088_p2, %p1087_p1 }
  0x43   :  { %542 = vmatmul.mubr.bf16.vlgmr.msra.gmra.mxu0 %v30_v63  ;;  %978 = vmatprep.subr.bf16.mxu1 %v1104_v41 }
  0x44   :  { %1010 = vmatprep.mubr.msk.bf16.mxu0 %vm1105_vm0, %v1104_v41  ;;  %995 = vmatpush3.bf16.msra.mxu0 %v1074_v8  ;;  %p1090_p4 = pnand %p1089_p3, %p1083_p0 }
  0x45   :  { %996 = vmatprep.subr.bf16.mxu0 %v1104_v41 }
  0x46   :  { %979 = vmatpush3.bf16.msra.mxu1 %v1068_v2 }
  0x47   :  { %980 = vmatprep.subr.bf16.mxu1 %v1104_v41 }
  0x48   :  { %997 = vmatpush3.bf16.msra.mxu0 %v1075_v9 }
  0x49   :  { %998 = vmatprep.subr.bf16.mxu0 %v1104_v41 }
  0x4a   :  { %981 = vmatpush3.bf16.msra.mxu1 %v1069_v3 }
  0x4b   :  { %982 = vmatprep.subr.bf16.mxu1 %v1104_v41 }
  0x4c   :  { %999 = vmatpush3.bf16.msra.mxu0 %v1076_v10 }
  0x4d   :  { %1000 = vmatprep.subr.bf16.mxu0 %v1104_v41 }
  0x4e   :  { %983 = vmatpush3.bf16.msra.mxu1 %v1070_v4 }
  0x4f   :  { %984 = vmatprep.subr.bf16.mxu1 %v1104_v41 }
  0x50   :  { %1001 = vmatpush3.bf16.msra.mxu0 %v1077_v11 }
  0x51   :  { %1002 = vmatprep.subr.bf16.mxu0 %v1104_v41 }
  0x52   :  { %985 = vmatpush3.bf16.msra.mxu1 %v1071_v5 }
  0x53   :  { %986 = vmatprep.subr.bf16.mxu1 %v1104_v41 }
  0x54   :  { %1003 = vmatpush3.bf16.msra.mxu0 %v1078_v12 }
  0x55   :  { %1004 = vmatprep.subr.bf16.mxu0 %v1104_v41 }
  0x56   :  { %987 = vmatpush3.bf16.msra.mxu1 %v1072_v6 }
  0x57   :  { %988 = vmatprep.subr.bf16.mxu1 %v1104_v41 }
  0x58   :  { %1005 = vmatpush3.bf16.msra.mxu0 %v1079_v13 }
  0x59   :  { %1006 = vmatprep.subr.bf16.mxu0 %v1104_v41 }
  0x5a   :  { %989 = vmatpush3.bf16.msra.mxu1 %v1073_v7 }
  0x5c   :  { %1007 = vmatpush3.bf16.msra.mxu0 %v1080_v14 }
  0x5d   :  { %1008 = vmatprep.subr.bf16.mxu0 %v1104_v41 }
  0x60   :  { %1009 = vmatpush3.bf16.msra.mxu0 %v1081_v39 }
  0xe3   :  { %v898_v15 = vpop.f32.mrf.mxu0 }
  0xe4   :  { %v920_v16 = vpop.f32.mrf.mxu1 }
  0xe5   :  { %v899_v17 = vpop.f32.mrf.mxu0 }
  0xe6   :  { %v921_v18 = vpop.f32.mrf.mxu1  ;;  %v900_v27 = vadd.f32 %v899_v17, %v898_v15 }
  0xe7   :  { %v901_v19 = vpop.f32.mrf.mxu0  ;;  %v922_v28 = vadd.f32 %v921_v18, %v920_v16 }
  0xe8   :  { %v923_v20 = vpop.f32.mrf.mxu1 }
  0xe9   :  { %v902_v21 = vpop.f32.mrf.mxu0  ;;  %v504_v31 = vadd.f32 %v922_v28, %v900_v27 }
  0xea   :  { %v924_v22 = vpop.f32.mrf.mxu1 }
  0xec   :  { %v583_v23 = vpop.f32.mrf.mxu1 }
  0xee   :  { %v972_v24 = vpop.f32.mrf.mxu1 }
  0xf0   :  { %v586_v25 = vpop.f32.mrf.mxu1 }
  0xf2   :  { %v973_v26 = vpop.f32.mrf.mxu1 }
 0x103   :  { %v942_v29 = vpop.f32.mrf.mxu0 }
 0x105   :  { %v943_v30 = vpop.f32.mrf.mxu0 }
 0x106   :  { %v944_v32 = vadd.f32 %v943_v30, %v942_v29 }
 0x107   :  { %v945_v33 = vpop.f32.mrf.mxu0 }
 0x108   :  { %v544_v34 = vadd.f32 %v944_v32, %v504_v31 }
 0x109   :  { %v946_v35 = vpop.f32.mrf.mxu0 }
 0x10a   :  { %v584_v36 = vadd.f32 %v583_v23, %v544_v34 }
 0x10c   :  { %v589_v37 = vmax.f32 %v584_v36, 0.0 }
 0x10e   :  { %v590_v38 = vpack.c.bf16 %v589_v37, %v589_v37 }
 0x110   :  { %991 = vmatmul.mubr.bf16.vlgmr.msra.gmra.mxu1 %v590_v38 }
 0x1d0   :  { %v689_v40 = vpop.f32.mrf.mxu1 }
 0x1d1   :  { %v695_v41 = vmax.f32 %v689_v40, 0.0 }
 0x1d2   :  { %v992_v42 = vpop.f32.mrf.mxu1 }
 0x1d3   :  { %v696_v43 = vpack.c.bf16 %v695_v41, %v695_v41 }
 0x1d4   :  { %v692_v44 = vpop.f32.mrf.mxu1 }
 0x1d5   :  { %1011 = vmatmul.mubr.bf16.vlgmr.msra.gmra.mxu0 %v696_v43 }
 0x1d6   :  { %v993_v45 = vpop.f32.mrf.mxu1 }
 0x295   :  { %v795_v46 = vpop.f32.mrf.mxu0 }
 0x296   :  { %801 = vst [vmem:[#allocation2] sm:$0xff] %v795_v46 }
 0x297   :  { %v1012_v47 = vpop.f32.mrf.mxu0 }
 0x298   :  { %1093 = shalt.err (!%p1090_p4)
}
 0x299   :  { %811 = dma.vmem_to_hbm [thread:$0]  %s809_s0, 128, %s1378_s4, [#allocation3]   ;;  %v798_v48 = vpop.f32.mrf.mxu0 }
 0x29b   :  { %v1013_v49 = vpop.f32.mrf.mxu0 }
 0x29c   :  { %1102 = dma.done.wait [#allocation3], 128  }
 0x29d   :  { %1103 = vsyncadd [#allocation3], 4294967168 }
 0x29e   :  { %815 = vsyncpa [#allocation3], 1 }

</bundles_post_ra>
